<compile_context>
chip_gen: v5e
topology: v5e:2x2
jax: 0.10.0
libtpu: 0.0.40
codegen_flags: <defaults>
</compile_context>

<pallas_src>
import functools

import jax
import jax.numpy as jnp
from jax import lax
from jax.experimental import pallas as pl
from jax.experimental.pallas import tpu as pltpu

BN_EPS = 1e-5
_MiB = 1024 * 1024


def _round_up(x, m):
    return (x + m - 1) // m * m


def _conv_stats_kernel(x_ref, w_ref, conv_ref, sum_ref, sq_ref, *, w_out, tile_m):
    # x_ref:    ((H+2)*W_out, K)  padded sample, resident across this sample's tiles
    # w_ref:    (3, Cout, K)      conv weight, one (Cout, K) slab per kh tap
    # conv_ref: (Cout, TILE_M)    conv output tile, channels on sublanes (lane-dense)
    # sum_ref:  (Cout, 1)         per-SAMPLE running sum   (resident across t only)
    # sq_ref:   (Cout, 1)         per-SAMPLE running sumsq (resident across t only)
    t = pl.program_id(1)

    @pl.when(t == 0)
    def _init():
        sum_ref[...] = jnp.zeros_like(sum_ref)
        sq_ref[...] = jnp.zeros_like(sq_ref)

    row0 = pl.multiple_of(t * tile_m, tile_m)

    def tap(kh):
        # (Cout, K) . (TILE_M, K)^T -> (Cout, TILE_M)   (q @ k.T pattern)
        x_slice = x_ref[pl.ds(row0 + kh * w_out, tile_m), :]
        return lax.dot_general(w_ref[kh], x_slice,
                               (((1,), (1,)), ((), ())),
                               preferred_element_type=jnp.float32)

    # Single accumulation chain: lets Mosaic keep partials in the MXU result buffer
    # (in-place accumulate on v7x's MRB; just shorter VALU filler on v5e/v6e).
    acc = tap(0)
    acc += tap(1)
    acc += tap(2)

    sum_ref[...] += jnp.sum(acc, axis=1, keepdims=True)
    sq_ref[...] += jnp.sum(acc * acc, axis=1, keepdims=True)
    conv_ref[...] = acc.astype(conv_ref.dtype)


def _bn_relu_kernel(conv_ref, scale_ref, shift_ref, out_ref):
    # conv_ref/out_ref: (Cout, TILE_BN); scale/shift: (Cout, 1) broadcast over lanes.
    y = conv_ref[...].astype(jnp.float32) * scale_ref[...] + shift_ref[...]
    out_ref[...] = jnp.maximum(y, 0.0).astype(out_ref.dtype)


def _pick_tile_conv(m_per_n, w_out):
    # Prefer 256-multiples (fills the v6e/v7x 256-wide MXU result lanes) that are
    # also h-aligned (multiples of w_out -> tap slices start on whole h rows).
    for cand in (2048, 1024, 512, 256):
        if m_per_n % cand == 0 and cand % w_out == 0:
            return cand
    for cand in (1024, 512, 256, 128):
        if m_per_n % cand == 0:
            return cand
    return m_per_n


def _pick_tile_bn(m_per_n):
    # Pure elementwise pass: widest lane-dense slab that divides m_per_n.
    for cand in (4096, 2048, 1024, 512, 256, 128):
        if m_per_n % cand == 0:
            return cand
    return m_per_n


def _vmem_limit(need_bytes):
    # Explicit scoped-VMEM budget: generous vs. the computed need, but capped at
    # v7x's 64 MiB physical VMEM (v5e/v6e have 128 MiB, so the cap is safe there).
    return int(min(64 * _MiB, max(2 * need_bytes, 16 * _MiB)))


@functools.partial(jax.jit, static_argnames=("tile_m", "tile_bn", "use_bf16"))
def skipconnet_forward(x, conv_w, conv_b, bn_gamma, bn_beta, *,
                       tile_m=None, tile_bn=None, use_bf16=True):
    """x: (N, Cin, H, W) NCHW, W % 10 == 0. Returns (N, Cout, H, W//10).

    use_bf16=True (default) feeds the MXU in bf16 and stores the conv intermediate
    (and therefore the aliased output) in bf16; use_bf16=False is the f32 path.
    """
    del conv_b  # cancels exactly: training-mode BN subtracts the per-channel batch mean
    N, Cin, H, W = x.shape
    Cout = conv_w.shape[0]
    assert W % 10 == 0, "W must be a multiple of the W kernel/stride (10)"
    w_out = W // 10
    K = Cin * 10
    m_per_n = H * w_out                 # output rows per sample
    mp_per_n = (H + 2) * w_out          # with the +/-1 H-halo rows

    if tile_m is None:
        tile_m = _pick_tile_conv(m_per_n, w_out)
    if tile_bn is None:
        tile_bn = _pick_tile_bn(m_per_n)
    assert m_per_n % tile_m == 0, "TODO(synk): ragged M tails need masking"
    assert m_per_n % tile_bn == 0, "TODO(synk): ragged M tails need masking"
    num_t = m_per_n // tile_m
    num_t_bn = m_per_n // tile_bn

    in_dtype = jnp.bfloat16 if use_bf16 else jnp.float32
    store_dtype = jnp.bfloat16 if use_bf16 else jnp.float32
    in_isz = 2 if use_bf16 else 4
    st_isz = 2 if use_bf16 else 4
    sub = 16 if use_bf16 else 8

    # ---- layout prep: ONE pass over x, no kh duplication (K = Cin*10 only) ----
    # Cast first so the pad/reshape/transpose layout pass moves half the bytes (bf16).
    xc = x.astype(in_dtype)
    xp = jnp.pad(xc, ((0, 0), (0, 0), (1, 1), (0, 0)))               # zero-pad H by 1
    xp = xp.reshape(N, Cin, H + 2, w_out, 10).transpose(0, 2, 3, 1, 4)
    xp = xp.reshape(N, mp_per_n, K)
    # weight: (Cout, Cin, 3, 10) -> (3, Cout, K) with K ordered (ci, kw) to match xp.
    w3 = conv_w.transpose(2, 0, 1, 3).reshape(3, Cout, K).astype(in_dtype)

    # ---- pass 1: conv (3-tap accumulated matmuls) + per-sample sum / sumsq ----
    # TODO(synk): for very large (H+2)*W_out*K the per-sample-resident xp block should
    # be row-tiled with a 2*w_out-row halo instead of kept fully resident (v7x 64 MiB).
    k_pad = _round_up(K, 128)
    need1 = (2 * _round_up(mp_per_n, sub) * k_pad * in_isz             # xp, dbl-buffered
             + 2 * 3 * _round_up(Cout, sub) * k_pad * in_isz           # w3
             + 2 * _round_up(Cout, sub) * _round_up(tile_m, 128) * st_isz  # conv tile
             + 4 * _round_up(Cout, 8) * 128 * 4)                       # stats tiles
    conv_t, ch_sum, ch_sq = pl.pallas_call(
        functools.partial(_conv_stats_kernel, w_out=w_out, tile_m=tile_m),
        out_shape=(
            jax.ShapeDtypeStruct((N, Cout, m_per_n), store_dtype),
            jax.ShapeDtypeStruct((N, Cout, 1), jnp.float32),
            jax.ShapeDtypeStruct((N, Cout, 1), jnp.float32),
        ),
        grid=(N, num_t),
        in_specs=[
            pl.BlockSpec((None, mp_per_n, K), lambda n, t: (n, 0, 0)),
            pl.BlockSpec((3, Cout, K), lambda n, t: (0, 0, 0)),
        ],
        out_specs=(
            pl.BlockSpec((None, Cout, tile_m), lambda n, t: (n, 0, t)),
            pl.BlockSpec((None, Cout, 1), lambda n, t: (n, 0, 0)),
            pl.BlockSpec((None, Cout, 1), lambda n, t: (n, 0, 0)),
        ),
        compiler_params=pltpu.CompilerParams(
            # Stats are per-sample partials (init at t==0), so the sample axis can be
            # megacore-sharded on v7x; only the in-sample tile axis must stay serial.
            dimension_semantics=("parallel", "arbitrary"),
            vmem_limit_bytes=_vmem_limit(need1)),
    )(xp, w3)

    # ---- finalize BN stats (O(N*Cout) glue): merge per-sample partials ----
    count = jnp.float32(N * m_per_n)
    mean = jnp.sum(ch_sum, axis=0) / count                 # (Cout, 1)
    ex2 = jnp.sum(ch_sq, axis=0) / count
    # TODO(synk): E[x^2]-E[x]^2 can cancel when |mean| >> std for a channel; clamp to
    # >= 0 here, switch to a pre-shifted / Welford-style merge if that ever bites.
    var = jnp.maximum(ex2 - mean * mean, 0.0)              # biased var (PyTorch norm)
    scale = bn_gamma.reshape(Cout, 1).astype(jnp.float32) * lax.rsqrt(var + BN_EPS)
    shift = bn_beta.reshape(Cout, 1).astype(jnp.float32) - mean * scale

    # ---- pass 2: normalize + ReLU, in place over conv_t (aliased), wide tiles ----
    need2 = (4 * _round_up(Cout, sub) * _round_up(tile_bn, 128) * st_isz
             + 4 * _round_up(Cout, 8) * 128 * 4)
    out_t = pl.pallas_call(
        _bn_relu_kernel,
        out_shape=jax.ShapeDtypeStruct((N, Cout, m_per_n), store_dtype),
        grid=(N, num_t_bn),
        in_specs=[
            pl.BlockSpec((None, Cout, tile_bn), lambda n, t: (n, 0, t)),
            pl.BlockSpec((Cout, 1), lambda n, t: (0, 0)),
            pl.BlockSpec((Cout, 1), lambda n, t: (0, 0)),
        ],
        out_specs=pl.BlockSpec((None, Cout, tile_bn), lambda n, t: (n, 0, t)),
        input_output_aliases={0: 0},          # BN+ReLU writes over the conv buffer
        compiler_params=pltpu.CompilerParams(
            dimension_semantics=("parallel", "parallel"),
            vmem_limit_bytes=_vmem_limit(need2)),
    )(conv_t, scale, shift)

    # (N, Cout, H*W_out) -> NCHW: pure reshape, no transpose / extra HBM pass.
    return out_t.reshape(N, Cout, H, w_out)


def _reference(x, conv_w, conv_b, bn_gamma, bn_beta):
    conv = lax.conv_general_dilated(
        x, conv_w, window_strides=(1, 10), padding=((1, 1), (0, 0)),
        dimension_numbers=("NCHW", "OIHW", "NCHW"))
    conv = conv + conv_b[None, :, None, None]
    mean = jnp.mean(conv, axis=(0, 2, 3), keepdims=True)
    var = jnp.mean((conv - mean) ** 2, axis=(0, 2, 3), keepdims=True)
    y = (conv - mean) * lax.rsqrt(var + BN_EPS)
    y = y * bn_gamma[None, :, None, None] + bn_beta[None, :, None, None]
    return jnp.maximum(y, 0.0)


if __name__ == "__main__":
    key = jax.random.PRNGKey(0)
    k_x, k_w, k_b = jax.random.split(key, 3)

    # Small demo shapes. w_out = W//10 = 8 keeps the halo tap slices on 8-row sublane
    # boundaries; tile_m=256 on the fast run forces 2 tiles/sample so the per-sample
    # stats accumulation and the pipelined multi-tile path are actually exercised.
    N, C_in, C_out, H, W = 2, 4, 8, 64, 80
    x = jax.random.normal(k_x, (N, C_in, H, W), dtype=jnp.float32)

    conv_w = 0.1 * jax.random.normal(k_w, (C_out, C_in, 3, 10), dtype=jnp.float32)
    conv_b = 0.1 * jax.random.normal(k_b, (C_out,), dtype=jnp.float32)
    bn_gamma = jnp.ones((C_out,), dtype=jnp.float32)   # PyTorch BN default weight
    bn_beta = jnp.zeros((C_out,), dtype=jnp.float32)   # PyTorch BN default bias

    ref = _reference(x, conv_w, conv_b, bn_gamma, bn_beta)

    # Default fast path: bf16 MXU inputs + bf16 conv intermediate, output written in
    # place over the intermediate (output dtype bf16).
    out_fast = skipconnet_forward(x, conv_w, conv_b, bn_gamma, bn_beta, tile_m=256)
    out_fast = jax.block_until_ready(out_fast)
    assert out_fast.shape == (N, C_out, H, W // 10), out_fast.shape
    assert out_fast.dtype == jnp.bfloat16, out_fast.dtype
    err_fast = float(jnp.max(jnp.abs(out_fast.astype(jnp.float32) - ref)))
    assert err_fast < 8e-2, err_fast

    # f32 path: tight check of the exact algorithm (auto-picked tiles).
    out_f32 = skipconnet_forward(x, conv_w, conv_b, bn_gamma, bn_beta, use_bf16=False)
    out_f32 = jax.block_until_ready(out_f32)
    assert out_f32.dtype == jnp.float32, out_f32.dtype
    err_f32 = float(jnp.max(jnp.abs(out_f32 - ref)))
    assert err_f32 < 1e-4, err_f32

    print("KERNEL_OK")
</pallas_src>

<mosaic_0001>
module attributes {stable_mosaic.version = 11 : i64} {
  func.func @_bn_relu_kernel(%arg0: i32, %arg1: i32, %arg2: memref<1x8x512xbf16, #tpu.memory_space<vmem>>, %arg3: memref<8x1xf32, #tpu.memory_space<vmem>>, %arg4: memref<8x1xf32, #tpu.memory_space<vmem>>, %arg5: memref<1x8x512xbf16, #tpu.memory_space<vmem>>) attributes {dimension_semantics = [#tpu.dimension_semantics<parallel>, #tpu.dimension_semantics<parallel>], iteration_bounds = array<i64: 2, 1>, scalar_prefetch = 0 : i64, scratch_operands = 0 : i64, tpu.core_type = #tpu.core_type<tc>, window_params = [{transform_indices = @transform_0, window_bounds = array<i64: 1, 8, 512>}, {pipeline_mode = #tpu.pipeline_mode<synchronous>, transform_indices = @transform_1, window_bounds = array<i64: 8, 1>}, {pipeline_mode = #tpu.pipeline_mode<synchronous>, transform_indices = @transform_2, window_bounds = array<i64: 8, 1>}, {transform_indices = @transform_3, window_bounds = array<i64: 1, 8, 512>}]} {
    %c0 = arith.constant 0 : index
    %c0_0 = arith.constant 0 : index
    %c0_1 = arith.constant 0 : index
    %0 = vector.load %arg2[%c0, %c0_0, %c0_1] : memref<1x8x512xbf16, #tpu.memory_space<vmem>>, vector<1x8x512xbf16>
    %1 = vector.shape_cast %0 : vector<1x8x512xbf16> to vector<8x512xbf16>
    %2 = arith.extf %1 : vector<8x512xbf16> to vector<8x512xf32>
    %c0_2 = arith.constant 0 : index
    %c0_3 = arith.constant 0 : index
    %3 = vector.load %arg3[%c0_2, %c0_3] : memref<8x1xf32, #tpu.memory_space<vmem>>, vector<8x1xf32>
    %4 = vector.broadcast %3 : vector<8x1xf32> to vector<8x512xf32>
    %5 = arith.mulf %2, %4 : vector<8x512xf32>
    %c0_4 = arith.constant 0 : index
    %c0_5 = arith.constant 0 : index
    %6 = vector.load %arg4[%c0_4, %c0_5] : memref<8x1xf32, #tpu.memory_space<vmem>>, vector<8x1xf32>
    %7 = vector.broadcast %6 : vector<8x1xf32> to vector<8x512xf32>
    %8 = arith.addf %5, %7 : vector<8x512xf32>
    %cst = arith.constant 0.000000e+00 : f32
    %9 = vector.broadcast %cst : f32 to vector<8x512xf32>
    %10 = arith.maximumf %8, %9 : vector<8x512xf32>
    %11 = arith.truncf %10 : vector<8x512xf32> to vector<8x512xbf16>
    %c0_6 = arith.constant 0 : index
    %c0_7 = arith.constant 0 : index
    %c0_8 = arith.constant 0 : index
    %12 = vector.load %arg5[%c0_6, %c0_7, %c0_8] : memref<1x8x512xbf16, #tpu.memory_space<vmem>>, vector<1x8x512xbf16>
    %13 = vector.shape_cast %12 : vector<1x8x512xbf16> to vector<8x512xbf16>
    %14 = vector.shape_cast %11 : vector<8x512xbf16> to vector<1x8x512xbf16>
    tpu.vector_store %arg5[%c0_6, %c0_7, %c0_8], %14 {strides = array<i32>} : memref<1x8x512xbf16, #tpu.memory_space<vmem>>, vector<1x8x512xbf16>,
    return
  }
  func.func @transform_0(%arg0: i32, %arg1: i32) -> (i32, i32, i32) {
    %c0_i32 = arith.constant 0 : i32
    %c0_i32_0 = arith.constant 0 : i32
    return %arg0, %c0_i32, %arg1 : i32, i32, i32
  }
  func.func @transform_1(%arg0: i32, %arg1: i32) -> (i32, i32) {
    %c0_i32 = arith.constant 0 : i32
    %c0_i32_0 = arith.constant 0 : i32
    %c0_i32_1 = arith.constant 0 : i32
    return %c0_i32, %c0_i32_0 : i32, i32
  }
  func.func @transform_2(%arg0: i32, %arg1: i32) -> (i32, i32) {
    %c0_i32 = arith.constant 0 : i32
    %c0_i32_0 = arith.constant 0 : i32
    %c0_i32_1 = arith.constant 0 : i32
    return %c0_i32, %c0_i32_0 : i32, i32
  }
  func.func @transform_3(%arg0: i32, %arg1: i32) -> (i32, i32, i32) {
    %c0_i32 = arith.constant 0 : i32
    %c0_i32_0 = arith.constant 0 : i32
    return %arg0, %c0_i32, %arg1 : i32, i32, i32
  }
}

module attributes {stable_mosaic.version = 11 : i64} {
  func.func @_conv_stats_kernel(%arg0: i32, %arg1: i32, %arg2: memref<1x528x40xbf16, #tpu.memory_space<vmem>>, %arg3: memref<3x8x40xbf16, #tpu.memory_space<vmem>>, %arg4: memref<1x8x256xbf16, #tpu.memory_space<vmem>>, %arg5: memref<1x8x1xf32, #tpu.memory_space<vmem>>, %arg6: memref<1x8x1xf32, #tpu.memory_space<vmem>>) attributes {dimension_semantics = [#tpu.dimension_semantics<parallel>, #tpu.dimension_semantics<arbitrary>], iteration_bounds = array<i64: 2, 2>, scalar_prefetch = 0 : i64, scratch_operands = 0 : i64, tpu.core_type = #tpu.core_type<tc>, window_params = [{transform_indices = @transform_0, window_bounds = array<i64: 1, 528, 40>}, {pipeline_mode = #tpu.pipeline_mode<synchronous>, transform_indices = @transform_1, window_bounds = array<i64: 3, 8, 40>}, {transform_indices = @transform_2, window_bounds = array<i64: 1, 8, 256>}, {transform_indices = @transform_3, window_bounds = array<i64: 1, 8, 1>}, {transform_indices = @transform_4, window_bounds = array<i64: 1, 8, 1>}]} {
    %c0_i32 = arith.constant 0 : i32
    %0 = arith.cmpi eq, %arg1, %c0_i32 : i32
    %1 = arith.extui %0 : i1 to i32
    %c0_i32_0 = arith.constant 0 : i32
    %2 = arith.cmpi ne, %1, %c0_i32_0 : i32
    scf.if %2 {
      %cst_33 = arith.constant 0.000000e+00 : f32
      %49 = vector.broadcast %cst_33 : f32 to vector<8x1xf32>
      %c0_34 = arith.constant 0 : index
      %c0_35 = arith.constant 0 : index
      %c0_36 = arith.constant 0 : index
      %50 = vector.load %arg5[%c0_34, %c0_35, %c0_36] : memref<1x8x1xf32, #tpu.memory_space<vmem>>, vector<1x8x1xf32>
      %51 = vector.shape_cast %50 : vector<1x8x1xf32> to vector<8x1xf32>
      %52 = vector.shape_cast %49 : vector<8x1xf32> to vector<1x8x1xf32>
      tpu.vector_store %arg5[%c0_34, %c0_35, %c0_36], %52 {strides = array<i32>} : memref<1x8x1xf32, #tpu.memory_space<vmem>>, vector<1x8x1xf32>,
      %cst_37 = arith.constant 0.000000e+00 : f32
      %53 = vector.broadcast %cst_37 : f32 to vector<8x1xf32>
      %c0_38 = arith.constant 0 : index
      %c0_39 = arith.constant 0 : index
      %c0_40 = arith.constant 0 : index
      %54 = vector.load %arg6[%c0_38, %c0_39, %c0_40] : memref<1x8x1xf32, #tpu.memory_space<vmem>>, vector<1x8x1xf32>
      %55 = vector.shape_cast %54 : vector<1x8x1xf32> to vector<8x1xf32>
      %56 = vector.shape_cast %53 : vector<8x1xf32> to vector<1x8x1xf32>
      tpu.vector_store %arg6[%c0_38, %c0_39, %c0_40], %56 {strides = array<i32>} : memref<1x8x1xf32, #tpu.memory_space<vmem>>, vector<1x8x1xf32>,
    } else {
    }
    %c256_i32 = arith.constant 256 : i32
    %3 = arith.muli %arg1, %c256_i32 : i32
    %4 = tpu.assume_multiple %3, 256 : i32
    %c0_i32_1 = arith.constant 0 : i32
    %5 = arith.addi %4, %c0_i32_1 : i32
    %c0 = arith.constant 0 : index
    %6 = arith.index_cast %5 : i32 to index
    %c0_2 = arith.constant 0 : index
    %7 = vector.load %arg2[%c0, %6, %c0_2] : memref<1x528x40xbf16, #tpu.memory_space<vmem>>, vector<1x256x40xbf16>
    %8 = vector.shape_cast %7 : vector<1x256x40xbf16> to vector<256x40xbf16>
    %c0_3 = arith.constant 0 : index
    %c0_4 = arith.constant 0 : index
    %c0_5 = arith.constant 0 : index
    %9 = vector.load %arg3[%c0_3, %c0_4, %c0_5] : memref<3x8x40xbf16, #tpu.memory_space<vmem>>, vector<1x8x40xbf16>
    %10 = vector.shape_cast %9 : vector<1x8x40xbf16> to vector<8x40xbf16>
    %cst = arith.constant dense<0.000000e+00> : vector<8x256xf32>
    %11 = tpu.matmul %10, %8, %cst {dimension_numbers = #tpu.dot_dimension_numbers<[1], [1], [0], [0], [0, 0, 1, 0], [], []>} : vector<8x40xbf16>, vector<256x40xbf16>, vector<8x256xf32> -> vector<8x256xf32>
    %c8_i32 = arith.constant 8 : i32
    %12 = arith.addi %4, %c8_i32 : i32
    %c0_6 = arith.constant 0 : index
    %13 = arith.index_cast %12 : i32 to index
    %c0_7 = arith.constant 0 : index
    %14 = vector.load %arg2[%c0_6, %13, %c0_7] : memref<1x528x40xbf16, #tpu.memory_space<vmem>>, vector<1x256x40xbf16>
    %15 = vector.shape_cast %14 : vector<1x256x40xbf16> to vector<256x40xbf16>
    %c1 = arith.constant 1 : index
    %c0_8 = arith.constant 0 : index
    %c0_9 = arith.constant 0 : index
    %16 = vector.load %arg3[%c1, %c0_8, %c0_9] : memref<3x8x40xbf16, #tpu.memory_space<vmem>>, vector<1x8x40xbf16>
    %17 = vector.shape_cast %16 : vector<1x8x40xbf16> to vector<8x40xbf16>
    %cst_10 = arith.constant dense<0.000000e+00> : vector<8x256xf32>
    %18 = tpu.matmul %17, %15, %cst_10 {dimension_numbers = #tpu.dot_dimension_numbers<[1], [1], [0], [0], [0, 0, 1, 0], [], []>} : vector<8x40xbf16>, vector<256x40xbf16>, vector<8x256xf32> -> vector<8x256xf32>
    %19 = arith.addf %11, %18 : vector<8x256xf32>
    %c16_i32 = arith.constant 16 : i32
    %20 = arith.addi %4, %c16_i32 : i32
    %c0_11 = arith.constant 0 : index
    %21 = arith.index_cast %20 : i32 to index
    %c0_12 = arith.constant 0 : index
    %22 = vector.load %arg2[%c0_11, %21, %c0_12] : memref<1x528x40xbf16, #tpu.memory_space<vmem>>, vector<1x256x40xbf16>
    %23 = vector.shape_cast %22 : vector<1x256x40xbf16> to vector<256x40xbf16>
    %c2 = arith.constant 2 : index
    %c0_13 = arith.constant 0 : index
    %c0_14 = arith.constant 0 : index
    %24 = vector.load %arg3[%c2, %c0_13, %c0_14] : memref<3x8x40xbf16, #tpu.memory_space<vmem>>, vector<1x8x40xbf16>
    %25 = vector.shape_cast %24 : vector<1x8x40xbf16> to vector<8x40xbf16>
    %cst_15 = arith.constant dense<0.000000e+00> : vector<8x256xf32>
    %26 = tpu.matmul %25, %23, %cst_15 {dimension_numbers = #tpu.dot_dimension_numbers<[1], [1], [0], [0], [0, 0, 1, 0], [], []>} : vector<8x40xbf16>, vector<256x40xbf16>, vector<8x256xf32> -> vector<8x256xf32>
    %27 = arith.addf %19, %26 : vector<8x256xf32>
    %c0_16 = arith.constant 0 : index
    %c0_17 = arith.constant 0 : index
    %c0_18 = arith.constant 0 : index
    %28 = vector.load %arg5[%c0_16, %c0_17, %c0_18] : memref<1x8x1xf32, #tpu.memory_space<vmem>>, vector<1x8x1xf32>
    %29 = vector.shape_cast %28 : vector<1x8x1xf32> to vector<8x1xf32>
    %cst_19 = arith.constant dense<0.000000e+00> : vector<8xf32>
    %30 = vector.multi_reduction <add>, %27, %cst_19 [1] : vector<8x256xf32> to vector<8xf32>
    %31 = vector.shape_cast %30 : vector<8xf32> to vector<8x1xf32>
    %32 = arith.addf %29, %31 : vector<8x1xf32>
    %c0_20 = arith.constant 0 : index
    %c0_21 = arith.constant 0 : index
    %c0_22 = arith.constant 0 : index
    %33 = vector.load %arg5[%c0_20, %c0_21, %c0_22] : memref<1x8x1xf32, #tpu.memory_space<vmem>>, vector<1x8x1xf32>
    %34 = vector.shape_cast %33 : vector<1x8x1xf32> to vector<8x1xf32>
    %35 = vector.shape_cast %32 : vector<8x1xf32> to vector<1x8x1xf32>
    tpu.vector_store %arg5[%c0_20, %c0_21, %c0_22], %35 {strides = array<i32>} : memref<1x8x1xf32, #tpu.memory_space<vmem>>, vector<1x8x1xf32>,
    %c0_23 = arith.constant 0 : index
    %c0_24 = arith.constant 0 : index
    %c0_25 = arith.constant 0 : index
    %36 = vector.load %arg6[%c0_23, %c0_24, %c0_25] : memref<1x8x1xf32, #tpu.memory_space<vmem>>, vector<1x8x1xf32>
    %37 = vector.shape_cast %36 : vector<1x8x1xf32> to vector<8x1xf32>
    %38 = arith.mulf %27, %27 : vector<8x256xf32>
    %cst_26 = arith.constant dense<0.000000e+00> : vector<8xf32>
    %39 = vector.multi_reduction <add>, %38, %cst_26 [1] : vector<8x256xf32> to vector<8xf32>
    %40 = vector.shape_cast %39 : vector<8xf32> to vector<8x1xf32>
    %41 = arith.addf %37, %40 : vector<8x1xf32>
    %c0_27 = arith.constant 0 : index
    %c0_28 = arith.constant 0 : index
    %c0_29 = arith.constant 0 : index
    %42 = vector.load %arg6[%c0_27, %c0_28, %c0_29] : memref<1x8x1xf32, #tpu.memory_space<vmem>>, vector<1x8x1xf32>
    %43 = vector.shape_cast %42 : vector<1x8x1xf32> to vector<8x1xf32>
    %44 = vector.shape_cast %41 : vector<8x1xf32> to vector<1x8x1xf32>
    tpu.vector_store %arg6[%c0_27, %c0_28, %c0_29], %44 {strides = array<i32>} : memref<1x8x1xf32, #tpu.memory_space<vmem>>, vector<1x8x1xf32>,
    %45 = arith.truncf %27 : vector<8x256xf32> to vector<8x256xbf16>
    %c0_30 = arith.constant 0 : index
    %c0_31 = arith.constant 0 : index
    %c0_32 = arith.constant 0 : index
    %46 = vector.load %arg4[%c0_30, %c0_31, %c0_32] : memref<1x8x256xbf16, #tpu.memory_space<vmem>>, vector<1x8x256xbf16>
    %47 = vector.shape_cast %46 : vector<1x8x256xbf16> to vector<8x256xbf16>
    %48 = vector.shape_cast %45 : vector<8x256xbf16> to vector<1x8x256xbf16>
    tpu.vector_store %arg4[%c0_30, %c0_31, %c0_32], %48 {strides = array<i32>} : memref<1x8x256xbf16, #tpu.memory_space<vmem>>, vector<1x8x256xbf16>,
    return
  }
  func.func @transform_0(%arg0: i32, %arg1: i32) -> (i32, i32, i32) {
    %c0_i32 = arith.constant 0 : i32
    %c0_i32_0 = arith.constant 0 : i32
    %c0_i32_1 = arith.constant 0 : i32
    return %arg0, %c0_i32, %c0_i32_0 : i32, i32, i32
  }
  func.func @transform_1(%arg0: i32, %arg1: i32) -> (i32, i32, i32) {
    %c0_i32 = arith.constant 0 : i32
    %c0_i32_0 = arith.constant 0 : i32
    %c0_i32_1 = arith.constant 0 : i32
    %c0_i32_2 = arith.constant 0 : i32
    return %c0_i32, %c0_i32_0, %c0_i32_1 : i32, i32, i32
  }
  func.func @transform_2(%arg0: i32, %arg1: i32) -> (i32, i32, i32) {
    %c0_i32 = arith.constant 0 : i32
    %c0_i32_0 = arith.constant 0 : i32
    return %arg0, %c0_i32, %arg1 : i32, i32, i32
  }
  func.func @transform_3(%arg0: i32, %arg1: i32) -> (i32, i32, i32) {
    %c0_i32 = arith.constant 0 : i32
    %c0_i32_0 = arith.constant 0 : i32
    %c0_i32_1 = arith.constant 0 : i32
    return %arg0, %c0_i32, %c0_i32_0 : i32, i32, i32
  }
  func.func @transform_4(%arg0: i32, %arg1: i32) -> (i32, i32, i32) {
    %c0_i32 = arith.constant 0 : i32
    %c0_i32_0 = arith.constant 0 : i32
    %c0_i32_1 = arith.constant 0 : i32
    return %arg0, %c0_i32, %c0_i32_0 : i32, i32, i32
  }
}

</mosaic_0001>

<bundles_post_ra>
// kernel: skipconnet_forward.3
= control target key start
LH: loop header
LB: loop body
LE: loop exit
PB: predicated region body
PF: predicated region fallthrough
CT: control target
= control target key end

     0   :  { %s415_s12 = smov 0   ;;  %s417_s13 = smov 0   ;;  %s454_s0 = inlined_call_operand.vmem [shape: bf16[2,8,512], index: 0, kind: input, shape index: {}, may-alias: {0,3}]   ;;  %s455_s1 = inlined_call_operand.vmem [shape: f32[8,1], index: 1, kind: input, shape index: {}]   ;;  %s456_s2 = inlined_call_operand.vmem [shape: f32[8,1], index: 2, kind: input, shape index: {}]   ;;  %s457_s3 = inlined_call_operand.vmem [shape: bf16[2,8,512], index: 3, kind: output, shape index: {}, may-alias: {0,3}]  }
   0x1   :  { %s419_s14 = smov 0  }
   0x2 LB: > { %s25_s15 = sadd.s32 1, %s388_s13  ;;  %p335_p0 = scmp.ge.s32.totalorder %s392_s14, 1  ;;  %s392_s14 = sphi %s419_s14, %s13_s14   ;;  %s388_s13 = sphi %s417_s13, %s459_s13   ;;  %s384_s12 = sphi %s415_s12, %s458_s12  }
   0x3   : > { %p27_p1 = scmp.ge.s32.totalorder %s25_s15, 2  ;;  %p158_p2 = scmp.lt.s32.totalorder %s392_s14, 3 }
   0x5   : > { %s461_s15 = smov (%p27_p1, %s25_s15), 0  ;;  %p159_p3 = pnand %p335_p0, %p158_p2 }
   0x6   : > { %p191_p4 = scmp.lt.s32.totalorder (!%p159_p3), %s384_s12, 1 }
   0x7   : > { %162 = sbr.rel (%p159_p3) target bundleno = 145 (0x91), region = 32 }
   0xc   : > { %v216_v0 = vld [vmem:[%s455_s1] sm:$0xff]  ;;  %v394_v1 = vmov 0   ;;  %s463_s12 = smov (!%p191_p4, %s384_s12), 1 }
   0xd   : > { %369 = vset.pattern.permute.xlu0 %v394_v1  ;;  %v226_v2 = vld [vmem:[%s456_s2] sm:$0xff]  ;;  %s342_s20 = sshll.u32 %s463_s12, 4 }
   0xe   : > { %219 = vperm.xlu0 %369, %v216_v0   ;;  %s198_s23 = scalar_lea.vmem %s454_s0, %s342_s20  ;;  %s208_s26 = scalar_lea.vmem %s457_s3, %s342_s20 }
   0xf   : > { %v210_v4 = vld [vmem:[%s198_s23] sm:$0xff]  ;;  %v211_v5 = vld [vmem:[%s198_s23 + $0x8] sm:$0xff] }
  0x10   : > { %v212_v6 = vunpack.c.l.bf16 %v210_v4  ;;  %v213_v7 = vunpack.c.h.bf16 %v210_v4  ;;  %v214_v8 = vunpack.c.l.bf16 %v211_v5  ;;  %v215_v9 = vunpack.c.h.bf16 %v211_v5 }
  0x16   : > { %229 = vperm.xlu0 %369, %v226_v2  }
  0x80   : > { %v220_v3 = vpop.permute.xlu0 %219 }
  0x81   : > { %v222_v10 = vmul.f32 %v220_v3, %v212_v6  ;;  %v223_v11 = vmul.f32 %v220_v3, %v213_v7  ;;  %v224_v12 = vmul.f32 %v220_v3, %v214_v8  ;;  %v225_v13 = vmul.f32 %v220_v3, %v215_v9 }
  0x88   : > { %v230_v14 = vpop.permute.xlu0 %229 }
  0x89   : > { %v232_v15 = vadd.f32 %v230_v14, %v222_v10  ;;  %v233_v16 = vadd.f32 %v230_v14, %v223_v11  ;;  %v234_v17 = vadd.f32 %v230_v14, %v224_v12  ;;  %v235_v18 = vadd.f32 %v230_v14, %v225_v13 }
  0x8b   : > { %v236_v19 = vmax.f32 %v232_v15, 0.0  ;;  %v237_v20 = vmax.f32 %v233_v16, 0.0  ;;  %v238_v21 = vmax.f32 %v234_v17, 0.0  ;;  %v239_v22 = vmax.f32 %v235_v18, 0.0 }
  0x8d   : > { %v240_v23 = vpack.c.bf16 %v237_v20, %v236_v19  ;;  %v241_v24 = vpack.c.bf16 %v239_v22, %v238_v21 }
  0x8f   : > { %242 = vst [vmem:[%s208_s26] sm:$0xff] %v240_v23 }
  0x90   : > { %243 = vst [vmem:[%s208_s26 + $0x8] sm:$0xff] %v241_v24 }
  0x91 PF: > { %s13_s14 = sadd.s32 1, %s392_s14   ;;  %s458_s12 = smov %s388_s13 }
  0x92   : > { %p10_p5 = scmp.ge.s32.totalorder %s13_s14, 4   ;;  %s459_s13 = smov %s461_s15 }
  0x94   :  { %12 = sbr.rel (!%p10_p5) target bundleno = 2 (0x2), region = 62 }

// kernel: skipconnet_forward.2
= control target key start
LH: loop header
LB: loop body
LE: loop exit
PB: predicated region body
PF: predicated region fallthrough
CT: control target
= control target key end

     0   :  { %s1382_s15 = smov 0   ;;  %s1384_s16 = smov 0   ;;  %s1584_s0 = inlined_call_operand.vmem [shape: bf16[2,528,40], index: 0, kind: input, shape index: {}]   ;;  %s1585_s1 = inlined_call_operand.vmem [shape: bf16[3,8,40], index: 1, kind: input, shape index: {}]   ;;  %s1586_s2 = inlined_call_operand.vmem [shape: bf16[2,8,512], index: 2, kind: output, shape index: {0}]   ;;  %s1587_s3 = inlined_call_operand.vmem [shape: f32[2,8,1], index: 3, kind: output, shape index: {1}]   ;;  %s1588_s4 = inlined_call_operand.vmem [shape: f32[2,8,1], index: 4, kind: output, shape index: {2}]  }
   0x1   :  { %s1386_s17 = smov 0   ;;  %s1388_s18 = smov 0  }
   0x2   :  { %s1390_s19 = smov 0  }
   0x3 LB: > { %s24_s20 = sadd.s32 1, %s1346_s17  ;;  %s27_s21 = sadd.s32 1, %s1350_s18  ;;  %s1354_s19 = sphi %s1390_s19, %s15_s19   ;;  %s1350_s18 = sphi %s1388_s18, %s1592_s18   ;;  %s1346_s17 = sphi %s1386_s17, %s1591_s17   ;;  %s1342_s16 = sphi %s1384_s16, %s1590_s16   ;;  %s1338_s15 = sphi %s1382_s15, %s1589_s15  }
   0x4   : > { %p25_p0 = scmp.ge.s32.totalorder %s24_s20, 2  ;;  %p1012_p1 = scmp.ge.s32.totalorder %s1354_s19, 1 }
   0x5   : > { %p181_p2 = scmp.lt.s32.totalorder %s1354_s19, 5 }
   0x6   : > { %s1594_s20 = smov (%p25_p0, %s24_s20), 0  ;;  %s1596_s21 = smov (!%p25_p0, %s27_s21), %s1350_s18 }
   0x7   : > { %p182_p3 = pnand %p1012_p1, %p181_p2  ;;  %p29_p4 = scmp.ge.s32.totalorder %s1596_s21, 2 }
   0x8   : > { %p219_p5 = scmp.lt.s32.totalorder (!%p182_p3), %s1342_s16, 1  ;;  %s1014_s22 = sshll.u32 (!%p182_p3), %s1338_s15, 1 }
   0x9   : > { %s1598_s21 = smov (%p29_p4, %s1596_s21), 0  ;;  %185 = sbr.rel (%p182_p3) target bundleno = 419 (0x1a3), region = 28 }
   0xa   : > { %p227_p6 = scmp.lt.s32.totalorder (!%p182_p3), %s1014_s22, 3  ;;  %p1019_p7 = scmp.ne.s32.totalorder (!%p182_p3), %s1338_s15, 0 }
   0xe   : > { %s1600_s16 = smov (!%p219_p5, %s1342_s16), 1  ;;  %s1602_s22 = smov (!%p227_p6, %s1014_s22), 3 }
   0xf   : > { %s1274_s23 = smul.u32 264, %s1600_s16  ;;  %s1015_s24 = sshll.u32 %s1600_s16, 2 }
  0x10   : > { %s230_s25 = sadd.s32 %s1015_s24, %s1602_s22  ;;  %s1017_s26 = sshll.u32 %s1600_s16, 3 }
  0x11   : > { %s1418_s29 = scalar_lea.vmem %s1584_s0, %s1274_s23  ;;  %s1016_s30 = sshll.u32 %s230_s25, 2 }
  0x12   : > { %s1423_s7 = scalar_lea.vmem %s1586_s2, %s1016_s30  ;;  %s1428_s10 = scalar_lea.vmem %s1587_s3, %s1017_s26 }
  0x13   : > { %s1433_s13 = scalar_lea.vmem %s1588_s4, %s1017_s26  ;;  %245 = sbr.rel (%p1019_p7) target bundleno = 27 (0x1b), region = 32 }
  0x18   : > { %vm246_vm0 = vcmask 7168   ;;  %v1356_v0 = vmov 0.0  }
  0x19   : > { %247 = vst.msk [vmem:[%s1428_s10] sm:$0xff] %vm246_vm0, %v1356_v0 }
  0x1a   : > { %248 = vst.msk [vmem:[%s1433_s13] sm:$0xff] %vm246_vm0, %v1356_v0 }
  0x1b PF: > { %s1439_s14 = sshll.u32 %s1338_s15, 8  ;;  %vm406_vm1 = vcmask 326656   ;;  %vm844_vm2 = vcmask 7168  }
  0x1c   : > { %s287_s16 = sadd.s32 8, %s1439_s14  ;;  %s250_s22 = sshra.s32 %s1439_s14, 3 }
  0x1d   : > { %s288_s23 = sshra.s32 %s287_s16, 3  ;;  %s1021_s24 = sshll.u32 %s250_s22, 2 }
  0x1e   : > { %s1022_s25 = sshll.u32 %s288_s23, 2  ;;  %s1449_s27 = scalar_lea.vmem %s1418_s29, %s1021_s24 }
  0x1f   : > { %s1444_s26 = scalar_lea.vmem %s1418_s29, %s1022_s25  ;;  %v1233_v5 = vld [vmem:[%s1449_s27 + $0x38] sm:$0xff]  ;;  %v1232_v13 = vld [vmem:[%s1449_s27 + $0x30] sm:$0xff]  ;;  %v1231_v21 = vld [vmem:[%s1449_s27 + $0x28] sm:$0xff]  ;;  %s641_s15 = sadd.s32 16, %s1439_s14 }
  0x20   : > { %v1249_v1 = vld [vmem:[%s1444_s26 + $0x38] sm:$0xff]  ;;  %v1248_v7 = vld [vmem:[%s1444_s26 + $0x30] sm:$0xff]  ;;  %v589_v9 = vsel %vm406_vm1, %v1233_v5, 0  ;;  %v1247_v15 = vld [vmem:[%s1444_s26 + $0x28] sm:$0xff]  ;;  %v586_v17 = vsel %vm406_vm1, %v1232_v13, 0  ;;  %v583_v25 = vsel %vm406_vm1, %v1231_v21, 0 }
  0x21   : > { %v1257_v2 = vld [vmem:[%s1444_s26 + $0x78] sm:$0xff]  ;;  %v432_v3 = vsel %vm406_vm1, %v1249_v1, 0  ;;  %v1256_v8 = vld [vmem:[%s1444_s26 + $0x70] sm:$0xff]  ;;  %615 = vmatpush.bf16.xpose.msra.mxu2 %v589_v9  ;;  %v429_v11 = vsel %vm406_vm1, %v1248_v7, 0  ;;  %v1255_v16 = vld [vmem:[%s1444_s26 + $0x68] sm:$0xff]  ;;  %v426_v19 = vsel %vm406_vm1, %v1247_v15, 0 }
  0x22   : > { %v456_v4 = vsel %vm406_vm1, %v1257_v2, 0  ;;  %458 = vmatpush.bf16.xpose.msra.mxu0 %v432_v3  ;;  %v1241_v6 = vld [vmem:[%s1449_s27 + $0x78] sm:$0xff]  ;;  %v453_v12 = vsel %vm406_vm1, %v1256_v8, 0  ;;  %v1240_v14 = vld [vmem:[%s1449_s27 + $0x70] sm:$0xff]  ;;  %v450_v20 = vsel %vm406_vm1, %v1255_v16, 0  ;;  %v1239_v22 = vld [vmem:[%s1449_s27 + $0x68] sm:$0xff] }
  0x23   : > { %471 = vmatpush.bf16.xpose.msra.mxu1 %v456_v4  ;;  %v613_v10 = vsel %vm406_vm1, %v1241_v6, 0  ;;  %v610_v18 = vsel %vm406_vm1, %v1240_v14, 0  ;;  %v1246_v23 = vld [vmem:[%s1444_s26 + $0x20] sm:$0xff]  ;;  %v607_v26 = vsel %vm406_vm1, %v1239_v22, 0  ;;  %v1245_v31 = vld [vmem:[%s1444_s26 + $0x18] sm:$0xff]  ;;  %v1244_v39 = vld [vmem:[%s1444_s26 + $0x10] sm:$0xff] }
  0x24   : > { %628 = vmatpush.bf16.xpose.msra.mxu3 %v613_v10  ;;  %v1254_v24 = vld [vmem:[%s1444_s26 + $0x60] sm:$0xff]  ;;  %v423_v27 = vsel %vm406_vm1, %v1246_v23, 0  ;;  %v1253_v32 = vld [vmem:[%s1444_s26 + $0x58] sm:$0xff]  ;;  %v420_v35 = vsel %vm406_vm1, %v1245_v31, 0  ;;  %v1252_v40 = vld [vmem:[%s1444_s26 + $0x50] sm:$0xff]  ;;  %v417_v43 = vsel %vm406_vm1, %v1244_v39, 0 }
  0x25   : > { %v447_v28 = vsel %vm406_vm1, %v1254_v24, 0  ;;  %v1230_v29 = vld [vmem:[%s1449_s27 + $0x20] sm:$0xff]  ;;  %v444_v36 = vsel %vm406_vm1, %v1253_v32, 0  ;;  %v1229_v37 = vld [vmem:[%s1449_s27 + $0x18] sm:$0xff]  ;;  %v441_v44 = vsel %vm406_vm1, %v1252_v40, 0  ;;  %v1228_v45 = vld [vmem:[%s1449_s27 + $0x10] sm:$0xff] }
  0x26   : > { %v1238_v30 = vld [vmem:[%s1449_s27 + $0x60] sm:$0xff]  ;;  %v580_v33 = vsel %vm406_vm1, %v1230_v29, 0  ;;  %v1237_v38 = vld [vmem:[%s1449_s27 + $0x58] sm:$0xff]  ;;  %v577_v41 = vsel %vm406_vm1, %v1229_v37, 0  ;;  %v1236_v46 = vld [vmem:[%s1449_s27 + $0x50] sm:$0xff]  ;;  %s642_s28 = sshra.s32 %s641_s15, 3 }
  0x27   : > { %v604_v34 = vsel %vm406_vm1, %v1238_v30, 0  ;;  %v601_v42 = vsel %vm406_vm1, %v1237_v38, 0  ;;  %v1243_v47 = vld [vmem:[%s1444_s26 + $0x8] sm:$0xff]  ;;  %v574_v49 = vsel %vm406_vm1, %v1228_v45, 0  ;;  %v598_v50 = vsel %vm406_vm1, %v1236_v46, 0  ;;  %s1156_s30 = sshll.u32 %s642_s28, 2 }
  0x28   : > { %v1251_v48 = vld [vmem:[%s1444_s26 + $0x48] sm:$0xff]  ;;  %v414_v51 = vsel %vm406_vm1, %v1243_v47, 0  ;;  %s1503_s5 = scalar_lea.vmem %s1418_s29, %s1156_s30  ;;  %v1242_v55 = vld [vmem:[%s1444_s26] sm:$0xff] }
  0x29   : > { %616 = vmatpush.bf16.xpose.msra.mxu2 %v586_v17  ;;  %v438_v52 = vsel %vm406_vm1, %v1251_v48, 0  ;;  %v1227_v53 = vld [vmem:[%s1449_s27 + $0x8] sm:$0xff]  ;;  %v1250_v56 = vld [vmem:[%s1444_s26 + $0x40] sm:$0xff]  ;;  %v1265_v57 = vld [vmem:[%s1503_s5 + $0x38] sm:$0xff]  ;;  %v411_v61 = vsel %vm406_vm1, %v1242_v55, 0 }
  0x2a   : > { %459 = vmatpush.bf16.xpose.msra.mxu0 %v429_v11  ;;  %v1235_v54 = vld [vmem:[%s1449_s27 + $0x48] sm:$0xff]  ;;  %v1273_v58 = vld [vmem:[%s1503_s5 + $0x78] sm:$0xff]  ;;  %v571_v59 = vsel %vm406_vm1, %v1227_v53, 0  ;;  %v435_v62 = vsel %vm406_vm1, %v1250_v56, 0  ;;  %v785_v63 = vsel %vm406_vm1, %v1265_v57, 0  ;;  %v1226_v1 = vld [vmem:[%s1449_s27] sm:$0xff] }
  0x2b   : > { %472 = vmatpush.bf16.xpose.msra.mxu1 %v453_v12  ;;  %v595_v60 = vsel %vm406_vm1, %v1235_v54, 0  ;;  %v809_v0 = vsel %vm406_vm1, %v1273_v58, 0  ;;  %v1234_v2 = vld [vmem:[%s1449_s27 + $0x40] sm:$0xff]  ;;  %v1264_v3 = vld [vmem:[%s1503_s5 + $0x30] sm:$0xff]  ;;  %v568_v5 = vsel %vm406_vm1, %v1226_v1, 0  ;;  %v1263_v11 = vld [vmem:[%s1503_s5 + $0x28] sm:$0xff] }
  0x2c   : > { %629 = vmatpush.bf16.xpose.msra.mxu3 %v610_v18  ;;  %v1272_v4 = vld [vmem:[%s1503_s5 + $0x70] sm:$0xff]  ;;  %v592_v6 = vsel %vm406_vm1, %v1234_v2, 0  ;;  %v1023_v7 = vld [vmem:[%s1585_s1 + $0x4] sm:$0xf]  ;;  %v782_v8 = vsel %vm406_vm1, %v1264_v3, 0  ;;  %v1271_v12 = vld [vmem:[%s1503_s5 + $0x68] sm:$0xff] }
  0x2d   : > { %v806_v9 = vsel %vm406_vm1, %v1272_v4, 0  ;;  %v286_v10 = vld [vmem:[%s1585_s1] sm:$0xf]  ;;  %v779_v13 = vsel %vm406_vm1, %v1263_v11, 0  ;;  %v803_v14 = vsel %vm406_vm1, %v1271_v12, 0  ;;  %v1260_v23 = vld [vmem:[%s1503_s5 + $0x10] sm:$0xff] }
  0x2e   : > { %v1262_v15 = vld [vmem:[%s1503_s5 + $0x20] sm:$0xff]  ;;  %v1268_v24 = vld [vmem:[%s1503_s5 + $0x50] sm:$0xff] }
  0x2f   : > { %v1270_v16 = vld [vmem:[%s1503_s5 + $0x60] sm:$0xff]  ;;  %v776_v17 = vsel %vm406_vm1, %v1262_v15, 0 }
  0x30   : > { %v800_v18 = vsel %vm406_vm1, %v1270_v16, 0  ;;  %v1258_v31 = vld [vmem:[%s1503_s5] sm:$0xff] }
  0x31   : > { %617 = vmatpush.bf16.xpose.msra.mxu2 %v583_v25  ;;  %v770_v25 = vsel %vm406_vm1, %v1260_v23, 0  ;;  %v1266_v32 = vld [vmem:[%s1503_s5 + $0x40] sm:$0xff] }
  0x32   : > { %460 = vmatpush.bf16.xpose.msra.mxu0 %v426_v19  ;;  %v1261_v19 = vld [vmem:[%s1503_s5 + $0x18] sm:$0xff]  ;;  %v839_v57 = vld [vmem:[%s1428_s10] sm:$0xff] }
  0x33   : > { %473 = vmatpush.bf16.xpose.msra.mxu1 %v450_v20  ;;  %v1269_v20 = vld [vmem:[%s1503_s5 + $0x58] sm:$0xff]  ;;  %v773_v21 = vsel %vm406_vm1, %v1261_v19, 0 }
  0x34   : > { %630 = vmatpush.bf16.xpose.msra.mxu3 %v607_v26  ;;  %v797_v22 = vsel %vm406_vm1, %v1269_v20, 0  ;;  %v794_v26 = vsel %vm406_vm1, %v1268_v24, 0 }
  0x39   : > { %618 = vmatpush.bf16.xpose.msra.mxu2 %v580_v33  ;;  %v764_v33 = vsel %vm406_vm1, %v1258_v31, 0 }
  0x3a   : > { %461 = vmatpush.bf16.xpose.msra.mxu0 %v423_v27  ;;  %v1259_v27 = vld [vmem:[%s1503_s5 + $0x8] sm:$0xff] }
  0x3b   : > { %474 = vmatpush.bf16.xpose.msra.mxu1 %v447_v28  ;;  %v1267_v28 = vld [vmem:[%s1503_s5 + $0x48] sm:$0xff]  ;;  %v767_v29 = vsel %vm406_vm1, %v1259_v27, 0 }
  0x3c   : > { %631 = vmatpush.bf16.xpose.msra.mxu3 %v604_v34  ;;  %v791_v30 = vsel %vm406_vm1, %v1267_v28, 0  ;;  %v788_v34 = vsel %vm406_vm1, %v1266_v32, 0 }
  0x41   : > { %619 = vmatpush.bf16.xpose.msra.mxu2 %v577_v41 }
  0x42   : > { %462 = vmatpush.bf16.xpose.msra.mxu0 %v420_v35  ;;  %v1157_v35 = vld [vmem:[%s1585_s1 + $0x8] sm:$0xf] }
  0x43   : > { %475 = vmatpush.bf16.xpose.msra.mxu1 %v444_v36 }
  0x44   : > { %632 = vmatpush.bf16.xpose.msra.mxu3 %v601_v42 }
  0x49   : > { %620 = vmatpush.bf16.xpose.msra.mxu2 %v574_v49 }
  0x4a   : > { %463 = vmatpush.bf16.xpose.msra.mxu0 %v417_v43 }
  0x4b   : > { %476 = vmatpush.bf16.xpose.msra.mxu1 %v441_v44 }
  0x4c   : > { %633 = vmatpush.bf16.xpose.msra.mxu3 %v598_v50 }
  0x51   : > { %621 = vmatpush.bf16.xpose.msra.mxu2 %v571_v59 }
  0x52   : > { %464 = vmatpush.bf16.xpose.msra.mxu0 %v414_v51 }
  0x53   : > { %477 = vmatpush.bf16.xpose.msra.mxu1 %v438_v52 }
  0x54   : > { %634 = vmatpush.bf16.xpose.msra.mxu3 %v595_v60  ;;  %v846_v60 = vld [vmem:[%s1433_s13] sm:$0xff] }
  0x59   : > { %622 = vmatpush.bf16.xpose.msra.mxu2 %v568_v5 }
  0x5a   : > { %465 = vmatpush.bf16.xpose.msra.mxu0 %v411_v61 }
  0x5b   : > { %478 = vmatpush.bf16.xpose.msra.mxu1 %v435_v62 }
  0x5c   : > { %635 = vmatpush.bf16.xpose.msra.mxu3 %v592_v6 }
  0x60   : > { %1154 = vmatmul.msk.bf16.vlgmr.msra.gmra.mxu2 %vm406_vm1, %v286_v10 }
  0x61   : > { %1088 = vmatmul.msk.bf16.vlgmr.msra.gmra.mxu0 %vm406_vm1, %v1023_v7 }
  0x62   : > { %811 = vmatpush.bf16.xpose.msrb.mxu0 %v785_v63  ;;  %1089 = vmatmul.msk.bf16.vlgmr.msra.gmra.mxu1 %vm406_vm1, %v1023_v7 }
  0x63   : > { %824 = vmatpush.bf16.xpose.msrb.mxu1 %v809_v0  ;;  %1155 = vmatmul.msk.bf16.vlgmr.msra.gmra.mxu3 %vm406_vm1, %v286_v10 }
  0x6a   : > { %812 = vmatpush.bf16.xpose.msrb.mxu0 %v782_v8 }
  0x6b   : > { %825 = vmatpush.bf16.xpose.msrb.mxu1 %v806_v9 }
  0x72   : > { %813 = vmatpush.bf16.xpose.msrb.mxu0 %v779_v13 }
  0x73   : > { %826 = vmatpush.bf16.xpose.msrb.mxu1 %v803_v14 }
  0x7a   : > { %814 = vmatpush.bf16.xpose.msrb.mxu0 %v776_v17 }
  0x7b   : > { %827 = vmatpush.bf16.xpose.msrb.mxu1 %v800_v18 }
  0x82   : > { %815 = vmatpush.bf16.xpose.msrb.mxu0 %v773_v21 }
  0x83   : > { %828 = vmatpush.bf16.xpose.msrb.mxu1 %v797_v22 }
  0x8a   : > { %816 = vmatpush.bf16.xpose.msrb.mxu0 %v770_v25 }
  0x8b   : > { %829 = vmatpush.bf16.xpose.msrb.mxu1 %v794_v26 }
  0x92   : > { %817 = vmatpush.bf16.xpose.msrb.mxu0 %v767_v29 }
  0x93   : > { %830 = vmatpush.bf16.xpose.msrb.mxu1 %v791_v30 }
  0x9a   : > { %818 = vmatpush.bf16.xpose.msrb.mxu0 %v764_v33 }
  0x9b   : > { %831 = vmatpush.bf16.xpose.msrb.mxu1 %v788_v34 }
  0xa1   : > { %1222 = vmatmul.msk.bf16.vlgmr.msrb.gmra.mxu0 %vm406_vm1, %v1157_v35 }
  0xa2   : > { %1223 = vmatmul.msk.bf16.vlgmr.msrb.gmra.mxu1 %vm406_vm1, %v1157_v35 }
  0xde   : > { %v467_v36 = vpop.f32.mrf.mxu0 }
  0xdf   : > { %v480_v37 = vpop.f32.mrf.mxu1 }
  0xe3   : > { %v624_v40 = vpop.f32.mrf.mxu2 }
  0xe4   : > { %v625_v44 = vadd.f32 %v624_v40, %v467_v36 }
  0xe6   : > { %v469_v38 = vpop.f32.mrf.mxu0  ;;  %v637_v41 = vpop.f32.mrf.mxu3 }
  0xe7   : > { %v482_v39 = vpop.f32.mrf.mxu1  ;;  %v638_v45 = vadd.f32 %v637_v41, %v480_v37 }
  0xeb   : > { %v626_v42 = vpop.f32.mrf.mxu2 }
  0xee   : > { %v639_v43 = vpop.f32.mrf.mxu3 }
 0x11e   : > { %v820_v46 = vpop.f32.mrf.mxu0 }
 0x11f   : > { %v833_v47 = vpop.f32.mrf.mxu1  ;;  %v837_v48 = vadd.f32 %v820_v46, %v625_v44 }
 0x120   : > { %v838_v49 = vadd.f32 %v833_v47, %v638_v45 }
 0x121   : > { %v847_v52 = vmul.f32 %v837_v48, %v837_v48 }
 0x122   : > { %v854_v50 = vpack.c.bf16 %v838_v49, %v837_v48  ;;  %v840_v51 = vadd.f32 %v838_v49, %v837_v48  ;;  %v848_v53 = vmul.f32 %v838_v49, %v838_v49 }
 0x124   : > { %855 = vst [vmem:[%s1423_s7] sm:$0xff] %v854_v50  ;;  %841 = vadd.xlane.f32.xlu0 %v840_v51  ;;  %v849_v56 = vadd.f32 %v848_v53, %v847_v52 }
 0x126   : > { %v822_v54 = vpop.f32.mrf.mxu0 }
 0x127   : > { %v835_v55 = vpop.f32.mrf.mxu1 }
 0x12c   : > { %850 = vadd.xlane.f32.xlu0 %v849_v56 }
 0x197   : > { %v842_v58 = vpop.xlane.xlu0 %841 }
 0x198   : > { %v843_v59 = vadd.f32 %v842_v58, %v839_v57 }
 0x19a   : > { %845 = vst.msk [vmem:[%s1428_s10] sm:$0xff] %vm844_vm2, %v843_v59 }
 0x19f   : > { %v851_v61 = vpop.xlane.xlu0 %850 }
 0x1a0   : > { %v852_v62 = vadd.f32 %v851_v61, %v846_v60 }
 0x1a2   : > { %853 = vst.msk [vmem:[%s1433_s13] sm:$0xff] %vm844_vm2, %v852_v62 }
 0x1a3 PF: > { %s15_s19 = sadd.s32 1, %s1354_s19   ;;  %s1589_s15 = smov %s1346_s17 }
 0x1a4   : > { %p12_p8 = scmp.ge.s32.totalorder %s15_s19, 6   ;;  %s1590_s16 = smov %s1350_s18 }
 0x1a5   : > { %s1591_s17 = smov %s1594_s20  ;;  %s1592_s18 = smov %s1598_s21 }
 0x1a6   :  { %14 = sbr.rel (!%p12_p8) target bundleno = 3 (0x3), region = 91 }

</bundles_post_ra>
